<compile_context>
chip_gen: v5e
topology: v5e:2x2
jax: 0.10.0
libtpu: 0.0.40
codegen_flags: <defaults>
</compile_context>

<pallas_src>
import math

import jax
import jax.numpy as jnp
from jax.experimental import pallas as pl
from jax.experimental.pallas import tpu as pltpu


def _round_up(x, m):
    return (x + m - 1) // m * m


def _vmem_budget():
    """Per-generation (vmem_limit_bytes, max adjacency row tile)."""
    try:
        cap = int(pltpu.get_tpu_info().vmem_capacity_bytes)
    except Exception:
        cap = 64 * 1024 * 1024  # assume the smallest (v7x per-TC) if unknown
    if cap >= 100 * 1024 * 1024:          # v5e / v6e: 128 MiB physical VMEM
        return 100 * 1024 * 1024, 4096
    return 48 * 1024 * 1024, 2048         # v7x: 64 MiB per TensorCore


# ---------------- kernel 1: support = X @ W  (row x f_in-reduction grid) ----

def _support_kernel(x_ref, w_ref, s_ref, acc_ref):
    k = pl.program_id(1)

    @pl.when(k == 0)
    def _():
        acc_ref[...] = jnp.zeros_like(acc_ref)

    acc_ref[...] += jnp.dot(
        x_ref[...].astype(jnp.bfloat16),
        w_ref[...].astype(jnp.bfloat16),
        preferred_element_type=jnp.float32,
    )

    @pl.when(k == pl.num_programs(1) - 1)
    def _():
        s_ref[...] = acc_ref[...].astype(s_ref.dtype)


# ---------------- kernel 2: out = adj @ support (+ bias) --------------------
# The output block is f32 and VMEM-resident across the reduction axis (its
# index_map returns (i, 0)), so accumulate directly into it: no scratch copy.

def _agg_kernel_bias(adj_ref, s_ref, b_ref, o_ref):
    k = pl.program_id(1)

    @pl.when(k == 0)
    def _():
        o_ref[...] = jnp.zeros_like(o_ref)

    o_ref[...] += jnp.dot(
        adj_ref[...].astype(jnp.bfloat16),
        s_ref[...],
        preferred_element_type=jnp.float32,
    )

    @pl.when(k == pl.num_programs(1) - 1)
    def _():
        o_ref[...] += b_ref[...]


def _agg_kernel_nobias(adj_ref, s_ref, o_ref):
    k = pl.program_id(1)

    @pl.when(k == 0)
    def _():
        o_ref[...] = jnp.zeros_like(o_ref)

    o_ref[...] += jnp.dot(
        adj_ref[...].astype(jnp.bfloat16),
        s_ref[...],
        preferred_element_type=jnp.float32,
    )


def graph_convolution(x, adj, weight, bias=None):
    """GCN forward: adj @ (x @ weight) + bias.

    x      : [N, F_in]    (native float dtype; cast to bf16 inside the kernel)
    adj    : [N, N]       dense (normalized) adjacency, native dtype
    weight : [F_in, F_out]
    bias   : [F_out] or None
    returns: [N, F_out] float32
    """
    n, f_in = x.shape
    f_out = weight.shape[1]

    vmem_limit, tm_cap = _vmem_budget()
    budget = int(vmem_limit * 0.6)        # headroom for pipeline internals

    f_out_p = _round_up(f_out, 128)       # lane-dense output columns
    adj_bytes = adj.dtype.itemsize
    x_bytes = x.dtype.itemsize
    w_bytes = weight.dtype.itemsize

    # ---- aggregation tiles: large row tile tm, smaller reduction tile tk ----
    tm = min(tm_cap, _round_up(n, 128))

    def agg_ws(tm_):
        tk_ = min(512, tm_)
        return (tm_ * tk_ * adj_bytes * 2       # adj tile, double-buffered
                + tk_ * f_out_p * 2 * 2         # bf16 support tile
                + tm_ * f_out_p * 4 * 2         # resident f32 output
                + f_out_p * 4 * 2)              # bias

    while tm > 256 and agg_ws(tm) > budget:
        tm //= 2                                # halvings stay multiples of 8
    tk = min(512, tm)
    if tm % tk != 0:
        tk = tm
    n_p = _round_up(n, tm)                      # tk | tm | n_p

    # ---- support tiles: K-tile f_in so wide-feature layers fit in VMEM ------
    tki = min(512, _round_up(f_in, 128))
    f_in_p = _round_up(f_in, tki)
    tms = tm                                    # divides n_p

    def sup_ws(tms_):
        return (tms_ * tki * x_bytes * 2
                + tki * f_out_p * w_bytes * 2
                + tms_ * f_out_p * 2 * 2
                + tms_ * f_out_p * 4)

    while tms > 256 and sup_ws(tms) > budget:
        tms //= 2

    def pad2(a, rows, cols):
        pr, pc = rows - a.shape[0], cols - a.shape[1]
        if pr == 0 and pc == 0:
            return a                            # no materialized copy needed
        return jnp.pad(a, ((0, pr), (0, pc)))

    x_p = pad2(x, n_p, f_in_p)
    w_p = pad2(weight, f_in_p, f_out_p)
    adj_p = pad2(adj, n_p, n_p)

    # ---- call 1: support = X @ W  -> bf16 [n_p, f_out_p] --------------------
    support = pl.pallas_call(
        _support_kernel,
        out_shape=jax.ShapeDtypeStruct((n_p, f_out_p), jnp.bfloat16),
        grid_spec=pltpu.PrefetchScalarGridSpec(
            num_scalar_prefetch=0,
            grid=(n_p // tms, f_in_p // tki),
            in_specs=[
                pl.BlockSpec((tms, tki), lambda i, k: (i, k)),        # X block
                pl.BlockSpec((tki, f_out_p), lambda i, k: (k, 0)),    # W block
            ],
            out_specs=pl.BlockSpec((tms, f_out_p), lambda i, k: (i, 0)),
            scratch_shapes=[pltpu.VMEM((tms, f_out_p), jnp.float32)],
        ),
        compiler_params=pltpu.CompilerParams(
            dimension_semantics=("parallel", "arbitrary"),
            vmem_limit_bytes=vmem_limit,
        ),
    )(x_p, w_p)

    # ---- call 2: out = adj @ support (+ bias), (row, reduction) tiled -------
    num_i, num_k = n_p // tm, n_p // tk
    if bias is not None:
        bias2d = pad2(bias.astype(jnp.float32).reshape(1, f_out), 1, f_out_p)
        kernel = _agg_kernel_bias
        in_specs = [
            pl.BlockSpec((tm, tk), lambda i, k: (i, k)),              # adj
            pl.BlockSpec((tk, f_out_p), lambda i, k: (k, 0)),         # support
            pl.BlockSpec((1, f_out_p), lambda i, k: (0, 0)),          # bias
        ]
        operands = (adj_p, support, bias2d)
    else:
        kernel = _agg_kernel_nobias
        in_specs = [
            pl.BlockSpec((tm, tk), lambda i, k: (i, k)),
            pl.BlockSpec((tk, f_out_p), lambda i, k: (k, 0)),
        ]
        operands = (adj_p, support)

    out_p = pl.pallas_call(
        kernel,
        out_shape=jax.ShapeDtypeStruct((n_p, f_out_p), jnp.float32),
        grid_spec=pltpu.PrefetchScalarGridSpec(
            num_scalar_prefetch=0,
            grid=(num_i, num_k),                     # reduction axis last
            in_specs=in_specs,
            out_specs=pl.BlockSpec((tm, f_out_p), lambda i, k: (i, 0)),
        ),
        compiler_params=pltpu.CompilerParams(
            dimension_semantics=("parallel", "arbitrary"),
            vmem_limit_bytes=vmem_limit,
        ),
    )(*operands)

    return out_p[:n, :f_out]


def init_params(key, in_features, out_features, use_bias=True):
    """Deterministic replica of GraphConvolution.reset_parameters()."""
    stdv = 1.0 / math.sqrt(out_features)
    kw, kb = jax.random.split(key)
    weight = jax.random.uniform(
        kw, (in_features, out_features), jnp.float32, minval=-stdv, maxval=stdv)
    bias = (jax.random.uniform(
        kb, (out_features,), jnp.float32, minval=-stdv, maxval=stdv)
        if use_bias else None)
    return weight, bias


if __name__ == "__main__":
    key = jax.random.PRNGKey(0)

    def run_case(case_key, n, f_in, f_out, use_bias):
        k_x, k_adj, k_p = jax.random.split(case_key, 3)
        x = jax.random.normal(k_x, (n, f_in), jnp.float32)
        # Symmetric row-normalized adjacency with self-loops (typical GCN input),
        # kept dense (torch.spmm with a dense adj is equivalent to mm).
        a = (jax.random.uniform(k_adj, (n, n)) < 0.1).astype(jnp.float32)
        a = jnp.maximum(a, a.T) + jnp.eye(n, dtype=jnp.float32)
        adj = a / jnp.sum(a, axis=1, keepdims=True)
        weight, bias = init_params(k_p, f_in, f_out, use_bias)

        out = jax.block_until_ready(graph_convolution(x, adj, weight, bias))

        hp = jax.lax.Precision.HIGHEST
        ref = jnp.dot(adj, jnp.dot(x, weight, precision=hp), precision=hp)
        if bias is not None:
            ref = ref + bias[None, :]
        assert out.shape == (n, f_out)
        err = float(jnp.max(jnp.abs(out - ref)))
        # bf16 MXU inputs + bf16 support intermediate vs f32 torch path.
        assert jnp.allclose(out, ref, atol=3e-2, rtol=3e-2), err

    k1, k2, k3 = jax.random.split(key, 3)
    run_case(k1, 64, 32, 32, True)      # small graph, bias
    run_case(k2, 64, 32, 32, False)     # bias=None path
    run_case(k3, 200, 640, 96, True)    # ragged N + K-tiled support (f_in > 512)

    print("KERNEL_OK")
</pallas_src>

<mosaic_0001>
module attributes {stable_mosaic.version = 11 : i64} {
  func.func @_support_kernel(%arg0: i32, %arg1: i32, %arg2: memref<128x128xf32, #tpu.memory_space<vmem>>, %arg3: memref<128x128xf32, #tpu.memory_space<vmem>>, %arg4: memref<128x128xbf16, #tpu.memory_space<vmem>>, %arg5: memref<128x128xf32, #tpu.memory_space<vmem>>) attributes {dimension_semantics = [#tpu.dimension_semantics<parallel>, #tpu.dimension_semantics<arbitrary>], iteration_bounds = array<i64: 1, 1>, scalar_prefetch = 0 : i64, scratch_operands = 1 : i64, tpu.core_type = #tpu.core_type<tc>, window_params = [{transform_indices = @transform_0, window_bounds = array<i64: 128, 128>}, {transform_indices = @transform_1, window_bounds = array<i64: 128, 128>}, {transform_indices = @transform_2, window_bounds = array<i64: 128, 128>}]} {
    %c0_i32 = arith.constant 0 : i32
    %0 = arith.cmpi eq, %arg1, %c0_i32 : i32
    %1 = arith.extui %0 : i1 to i32
    %c0_i32_0 = arith.constant 0 : i32
    %2 = arith.cmpi ne, %1, %c0_i32_0 : i32
    scf.if %2 {
      %cst_10 = arith.constant 0.000000e+00 : f32
      %14 = vector.broadcast %cst_10 : f32 to vector<128x128xf32>
      %c0_11 = arith.constant 0 : index
      %c0_12 = arith.constant 0 : index
      %15 = vector.load %arg5[%c0_11, %c0_12] : memref<128x128xf32, #tpu.memory_space<vmem>>, vector<128x128xf32>
      tpu.vector_store %arg5[%c0_11, %c0_12], %14 {strides = array<i32>} : memref<128x128xf32, #tpu.memory_space<vmem>>, vector<128x128xf32>,
    } else {
    }
    %c0 = arith.constant 0 : index
    %c0_1 = arith.constant 0 : index
    %3 = vector.load %arg5[%c0, %c0_1] : memref<128x128xf32, #tpu.memory_space<vmem>>, vector<128x128xf32>
    %c0_2 = arith.constant 0 : index
    %c0_3 = arith.constant 0 : index
    %4 = vector.load %arg2[%c0_2, %c0_3] : memref<128x128xf32, #tpu.memory_space<vmem>>, vector<128x128xf32>
    %5 = arith.truncf %4 : vector<128x128xf32> to vector<128x128xbf16>
    %c0_4 = arith.constant 0 : index
    %c0_5 = arith.constant 0 : index
    %6 = vector.load %arg3[%c0_4, %c0_5] : memref<128x128xf32, #tpu.memory_space<vmem>>, vector<128x128xf32>
    %7 = arith.truncf %6 : vector<128x128xf32> to vector<128x128xbf16>
    %cst = arith.constant dense<0.000000e+00> : vector<128x128xf32>
    %8 = tpu.matmul %5, %7, %cst {dimension_numbers = #tpu.dot_dimension_numbers<[1], [0], [0], [1], [0, 0, 1, 1], [], []>} : vector<128x128xbf16>, vector<128x128xbf16>, vector<128x128xf32> -> vector<128x128xf32>
    %9 = arith.addf %3, %8 : vector<128x128xf32>
    %c0_6 = arith.constant 0 : index
    %c0_7 = arith.constant 0 : index
    %10 = vector.load %arg5[%c0_6, %c0_7] : memref<128x128xf32, #tpu.memory_space<vmem>>, vector<128x128xf32>
    tpu.vector_store %arg5[%c0_6, %c0_7], %9 {strides = array<i32>} : memref<128x128xf32, #tpu.memory_space<vmem>>, vector<128x128xf32>,
    %c0_i32_8 = arith.constant 0 : i32
    %11 = arith.cmpi eq, %arg1, %c0_i32_8 : i32
    %12 = arith.extui %11 : i1 to i32
    %c0_i32_9 = arith.constant 0 : i32
    %13 = arith.cmpi ne, %12, %c0_i32_9 : i32
    scf.if %13 {
      %c0_10 = arith.constant 0 : index
      %c0_11 = arith.constant 0 : index
      %14 = vector.load %arg5[%c0_10, %c0_11] : memref<128x128xf32, #tpu.memory_space<vmem>>, vector<128x128xf32>
      %15 = arith.truncf %14 : vector<128x128xf32> to vector<128x128xbf16>
      %c0_12 = arith.constant 0 : index
      %c0_13 = arith.constant 0 : index
      %16 = vector.load %arg4[%c0_12, %c0_13] : memref<128x128xbf16, #tpu.memory_space<vmem>>, vector<128x128xbf16>
      tpu.vector_store %arg4[%c0_12, %c0_13], %15 {strides = array<i32>} : memref<128x128xbf16, #tpu.memory_space<vmem>>, vector<128x128xbf16>,
    } else {
    }
    return
  }
  func.func @transform_0(%arg0: i32, %arg1: i32) -> (i32, i32) {
    %c0_i32 = arith.constant 0 : i32
    return %arg0, %arg1 : i32, i32
  }
  func.func @transform_1(%arg0: i32, %arg1: i32) -> (i32, i32) {
    %c0_i32 = arith.constant 0 : i32
    %c0_i32_0 = arith.constant 0 : i32
    return %arg1, %c0_i32 : i32, i32
  }
  func.func @transform_2(%arg0: i32, %arg1: i32) -> (i32, i32) {
    %c0_i32 = arith.constant 0 : i32
    %c0_i32_0 = arith.constant 0 : i32
    return %arg0, %c0_i32 : i32, i32
  }
}

</mosaic_0001>

<bundles_post_ra>
// kernel: tpu_custom_call.1
= control target key start
LH: loop header
LB: loop body
LE: loop exit
PB: predicated region body
PF: predicated region fallthrough
CT: control target
= control target key end

     0   :  { %7 = vsyncpa [#allocation4], 0  ;;  %s467_s0 = inlined_call_operand.hbm [shape: f32[128,128], index: 0, kind: input, shape index: {}]   ;;  %s468_s1 = inlined_call_operand.hbm [shape: f32[128,128], index: 1, kind: input, shape index: {}]   ;;  %s469_s2 = inlined_call_operand.hbm [shape: bf16[128,128], index: 2, kind: output, shape index: {}]  }
   0x1   :  { %8 = vsyncpa [#allocation7], 0 }
   0x2   :  { %9 = vsyncpa [#allocation5], 0  ;;  %s14_s11 = sshll.u32 %s467_s0, 4  ;;  %s436_s12 = smov [#allocation3]   ;;  %s15_s11 = int_to_ptr.hbm [resolvable:$true] %s14_s11 }
   0x3   :  { %s16_s13 = sshll.u32 %s436_s12, 4  ;;  %s27_s16 = sshll.u32 %s468_s1, 4  ;;  %s17_s13 = int_to_ptr.vmem [resolvable:$true] %s16_s13  ;;  %s28_s16 = int_to_ptr.hbm [resolvable:$true] %s27_s16 }
   0x4   :  { %s437_s17 = smov 128   ;;  %s438_s18 = smov 8  }
   0x5   :  { %22 = dma.hbm_to_vmem [thread:$0]  %s15_s11, 2048, %s17_s13, [#allocation4], %s437_s17, %s437_s17, %s438_s18  }
   0x6   :  { %s439_s19 = smov [#allocation6]  }
   0x7   :  { %s29_s20 = sshll.u32 %s439_s19, 4  ;;  %s30_s20 = int_to_ptr.vmem [resolvable:$true] %s29_s20 }
   0x8   :  { %35 = dma.hbm_to_vmem [thread:$0]  %s28_s16, 2048, %s30_s20, [#allocation7], %s437_s17, %s437_s17, %s438_s18  }
   0x9   :  { %430 = dma.done.wait [#allocation4], 2048  }
   0xa   :  { %431 = vsyncadd [#allocation4], 4294965248 }
   0xb   :  { %432 = dma.done.wait [#allocation7], 2048  }
   0xc   :  { %433 = vsyncadd [#allocation7], 4294965248  ;;  %v118_v0 = vld [vmem:[#allocation6 + $0x70] sm:$0xff]  ;;  %v119_v1 = vld [vmem:[#allocation6 + $0x78] sm:$0xff]  ;;  %s440_s0 = smov [#allocation8]   ;;  %s266_s23 = sshll.u32 %s469_s2, 4  ;;  %s267_s23 = int_to_ptr.hbm [resolvable:$true] %s266_s23 }
   0xd   :  { %v116_v2 = vld [vmem:[#allocation6 + $0x60] sm:$0xff]  ;;  %v127_v3 = vpack.c.bf16 %v119_v1, %v118_v0  ;;  %v117_v4 = vld [vmem:[#allocation6 + $0x68] sm:$0xff]  ;;  %v114_v6 = vld [vmem:[#allocation6 + $0x50] sm:$0xff]  ;;  %s264_s1 = sshll.u32 %s440_s0, 4  ;;  %s441_s24 = smov 64   ;;  %s265_s1 = int_to_ptr.vmem [resolvable:$true] %s264_s1 }
   0xe   :  { %v126_v5 = vpack.c.bf16 %v117_v4, %v116_v2  ;;  %v115_v7 = vld [vmem:[#allocation6 + $0x58] sm:$0xff]  ;;  %v112_v9 = vld [vmem:[#allocation6 + $0x40] sm:$0xff]  ;;  %v113_v10 = vld [vmem:[#allocation6 + $0x48] sm:$0xff]  ;;  %s442_s25 = smov 4  }
   0xf   :  { %128 = vmatpush.bf16.msra.mxu0 %v127_v3  ;;  %327 = vmatpush.bf16.msra.mxu1 %v127_v3  ;;  %v125_v8 = vpack.c.bf16 %v115_v7, %v114_v6  ;;  %v124_v11 = vpack.c.bf16 %v113_v10, %v112_v9  ;;  %v110_v12 = vld [vmem:[#allocation6 + $0x30] sm:$0xff]  ;;  %v111_v13 = vld [vmem:[#allocation6 + $0x38] sm:$0xff]  ;;  %v108_v15 = vld [vmem:[#allocation6 + $0x20] sm:$0xff] }
  0x10   :  { %328 = vmatpush.bf16.msra.mxu2 %v127_v3  ;;  %329 = vmatpush.bf16.msra.mxu3 %v127_v3  ;;  %v123_v14 = vpack.c.bf16 %v111_v13, %v110_v12  ;;  %v109_v16 = vld [vmem:[#allocation6 + $0x28] sm:$0xff]  ;;  %v106_v18 = vld [vmem:[#allocation6 + $0x10] sm:$0xff]  ;;  %v107_v19 = vld [vmem:[#allocation6 + $0x18] sm:$0xff] }
  0x11   :  { %v122_v17 = vpack.c.bf16 %v109_v16, %v108_v15  ;;  %v121_v20 = vpack.c.bf16 %v107_v19, %v106_v18  ;;  %v104_v21 = vld [vmem:[#allocation6] sm:$0xff]  ;;  %v105_v22 = vld [vmem:[#allocation6 + $0x8] sm:$0xff]  ;;  %v82_v36 = vld [vmem:[#allocation3 + $0x10] sm:$0xff] }
  0x12   :  { %v80_v23 = vld [vmem:[#allocation3] sm:$0xff]  ;;  %v81_v24 = vld [vmem:[#allocation3 + $0x8] sm:$0xff]  ;;  %v120_v25 = vpack.c.bf16 %v105_v22, %v104_v21  ;;  %v83_v37 = vld [vmem:[#allocation3 + $0x18] sm:$0xff] }
  0x13   :  { %129 = vmatpush.bf16.msra.mxu0 %v126_v5  ;;  %330 = vmatpush.bf16.msra.mxu1 %v126_v5  ;;  %v84_v26 = vld [vmem:[#allocation3 + $0x20] sm:$0xff]  ;;  %v85_v27 = vld [vmem:[#allocation3 + $0x28] sm:$0xff]  ;;  %v96_v32 = vpack.c.bf16 %v81_v24, %v80_v23  ;;  %v86_v38 = vld [vmem:[#allocation3 + $0x30] sm:$0xff]  ;;  %v97_v44 = vpack.c.bf16 %v83_v37, %v82_v36 }
  0x14   :  { %331 = vmatpush.bf16.msra.mxu2 %v126_v5  ;;  %332 = vmatpush.bf16.msra.mxu3 %v126_v5  ;;  %v88_v28 = vld [vmem:[#allocation3 + $0x40] sm:$0xff]  ;;  %v89_v29 = vld [vmem:[#allocation3 + $0x48] sm:$0xff]  ;;  %v98_v33 = vpack.c.bf16 %v85_v27, %v84_v26  ;;  %v87_v39 = vld [vmem:[#allocation3 + $0x38] sm:$0xff] }
  0x15   :  { %v92_v30 = vld [vmem:[#allocation3 + $0x60] sm:$0xff]  ;;  %v93_v31 = vld [vmem:[#allocation3 + $0x68] sm:$0xff]  ;;  %v100_v34 = vpack.c.bf16 %v89_v29, %v88_v28  ;;  %v90_v40 = vld [vmem:[#allocation3 + $0x50] sm:$0xff]  ;;  %v99_v45 = vpack.c.bf16 %v87_v39, %v86_v38 }
  0x16   :  { %v102_v35 = vpack.c.bf16 %v93_v31, %v92_v30  ;;  %v91_v41 = vld [vmem:[#allocation3 + $0x58] sm:$0xff]  ;;  %v94_v42 = vld [vmem:[#allocation3 + $0x70] sm:$0xff] }
  0x17   :  { %130 = vmatpush.bf16.msra.mxu0 %v125_v8  ;;  %333 = vmatpush.bf16.msra.mxu1 %v125_v8  ;;  %v95_v43 = vld [vmem:[#allocation3 + $0x78] sm:$0xff]  ;;  %v101_v46 = vpack.c.bf16 %v91_v41, %v90_v40 }
  0x18   :  { %334 = vmatpush.bf16.msra.mxu2 %v125_v8  ;;  %335 = vmatpush.bf16.msra.mxu3 %v125_v8  ;;  %v103_v47 = vpack.c.bf16 %v95_v43, %v94_v42 }
  0x1b   :  { %131 = vmatpush.bf16.msra.mxu0 %v124_v11  ;;  %336 = vmatpush.bf16.msra.mxu1 %v124_v11 }
  0x1c   :  { %337 = vmatpush.bf16.msra.mxu2 %v124_v11  ;;  %338 = vmatpush.bf16.msra.mxu3 %v124_v11 }
  0x1f   :  { %132 = vmatpush.bf16.msra.mxu0 %v123_v14  ;;  %339 = vmatpush.bf16.msra.mxu1 %v123_v14 }
  0x20   :  { %340 = vmatpush.bf16.msra.mxu2 %v123_v14  ;;  %341 = vmatpush.bf16.msra.mxu3 %v123_v14 }
  0x23   :  { %133 = vmatpush.bf16.msra.mxu0 %v122_v17  ;;  %342 = vmatpush.bf16.msra.mxu1 %v122_v17 }
  0x24   :  { %343 = vmatpush.bf16.msra.mxu2 %v122_v17  ;;  %344 = vmatpush.bf16.msra.mxu3 %v122_v17 }
  0x27   :  { %134 = vmatpush.bf16.msra.mxu0 %v121_v20  ;;  %345 = vmatpush.bf16.msra.mxu1 %v121_v20 }
  0x28   :  { %346 = vmatpush.bf16.msra.mxu2 %v121_v20  ;;  %347 = vmatpush.bf16.msra.mxu3 %v121_v20 }
  0x2b   :  { %135 = vmatpush.bf16.msra.mxu0 %v120_v25  ;;  %348 = vmatpush.bf16.msra.mxu1 %v120_v25 }
  0x2c   :  { %349 = vmatpush.bf16.msra.mxu2 %v120_v25  ;;  %350 = vmatpush.bf16.msra.mxu3 %v120_v25 }
  0x2e   :  { %136 = vmatmul.bf16.vlgmr.msra.gmra.mxu0 %v96_v32  ;;  %146 = vmatmul.bf16.vlgmr.msra.gmra.mxu1 %v98_v33 }
  0x2f   :  { %156 = vmatmul.bf16.vlgmr.msra.gmra.mxu2 %v100_v34  ;;  %166 = vmatmul.bf16.vlgmr.msra.gmra.mxu3 %v102_v35 }
  0x3e   :  { %141 = vmatmul.bf16.gmra.mxu0 %v97_v44  ;;  %151 = vmatmul.bf16.gmra.mxu1 %v99_v45 }
  0x3f   :  { %161 = vmatmul.bf16.gmra.mxu2 %v101_v46  ;;  %171 = vmatmul.bf16.gmra.mxu3 %v103_v47 }
  0xab   :  { %v137_v48 = vpop.f32.mrf.mxu0  ;;  %v147_v49 = vpop.f32.mrf.mxu1 }
  0xb2   :  { %v157_v50 = vpop.f32.mrf.mxu2  ;;  %v167_v51 = vpop.f32.mrf.mxu3 }
  0xb3   :  { %v139_v52 = vpop.f32.mrf.mxu0  ;;  %v149_v53 = vpop.f32.mrf.mxu1 }
  0xb4   :  { %v283_v54 = vpack.c.bf16 %v139_v52, %v137_v48  ;;  %v293_v55 = vpack.c.bf16 %v149_v53, %v147_v49 }
  0xb6   :  { %284 = vst [vmem:[#allocation8] sm:$0xff] %v283_v54  }
  0xb7   :  { %321 = vst [vmem:[#allocation8 + $0x10] sm:$0xff] %v293_v55  }
  0xba   :  { %v159_v56 = vpop.f32.mrf.mxu2  ;;  %v169_v57 = vpop.f32.mrf.mxu3 }
  0xbb   :  { %v303_v58 = vpack.c.bf16 %v159_v56, %v157_v50  ;;  %v313_v59 = vpack.c.bf16 %v169_v57, %v167_v51  ;;  %v142_v60 = vpop.f32.mrf.mxu0  ;;  %v152_v61 = vpop.f32.mrf.mxu1 }
  0xbd   :  { %323 = vst [vmem:[#allocation8 + $0x20] sm:$0xff] %v303_v58  }
  0xbe   :  { %325 = vst [vmem:[#allocation8 + $0x30] sm:$0xff] %v313_v59  }
  0xc2   :  { %v162_v62 = vpop.f32.mrf.mxu2  ;;  %v172_v63 = vpop.f32.mrf.mxu3 }
  0xc3   :  { %v144_v0 = vpop.f32.mrf.mxu0  ;;  %v154_v1 = vpop.f32.mrf.mxu1 }
  0xc4   :  { %v288_v2 = vpack.c.bf16 %v144_v0, %v142_v60  ;;  %v298_v3 = vpack.c.bf16 %v154_v1, %v152_v61 }
  0xc6   :  { %320 = vst [vmem:[#allocation8 + $0x8] sm:$0xff] %v288_v2  }
  0xc7   :  { %322 = vst [vmem:[#allocation8 + $0x18] sm:$0xff] %v298_v3  }
  0xca   :  { %v164_v4 = vpop.f32.mrf.mxu2  ;;  %v174_v5 = vpop.f32.mrf.mxu3 }
  0xcb   :  { %v308_v6 = vpack.c.bf16 %v164_v4, %v162_v62  ;;  %v318_v7 = vpack.c.bf16 %v174_v5, %v172_v63 }
  0xcd   :  { %324 = vst [vmem:[#allocation8 + $0x28] sm:$0xff] %v308_v6  }
  0xce   :  { %326 = vst [vmem:[#allocation8 + $0x38] sm:$0xff] %v318_v7  }
  0xcf   :  { %272 = dma.vmem_to_hbm [thread:$0]  %s265_s1, 1024, %s267_s23, [#allocation5], %s441_s24, %s441_s24, %s442_s25  }
  0xd0   :  { %434 = dma.done.wait [#allocation5], 1024  }
  0xd1   :  { %435 = vsyncadd [#allocation5], 4294966272 }
  0xd2   :  { %277 = vsyncpa [#allocation4], 1 }
  0xd3   :  { %278 = vsyncpa [#allocation7], 1 }
  0xd4   :  { %279 = vsyncpa [#allocation5], 1 }

</bundles_post_ra>
